<compile_context>
chip_gen: v6e
topology: v6e:2x2x1
jax: 0.10.0
libtpu: 0.0.40
codegen_flags: <defaults>
</compile_context>

<pallas_src>
import jax
import jax.numpy as jnp
import numpy as np
from jax.experimental import pallas as pl
from jax.experimental.pallas import tpu as pltpu

V_TH = 1.0        # spikingjelly IFNode default v_threshold; v_reset = 0.0 (hard reset)
NEG_PAD = -1e9    # bias value for padded lanes -> they can never cross the threshold
LANE = 128


def projector_ssl_kernel(x_ref, w1_ref, b1_ref, w2_ref, b2_ref, w3_ref, b3_ref,
                         spk_ref, lin_ref, v1_ref, v2_ref, v3_ref):
    t = pl.program_id(0)

    @pl.when(t == 0)
    def _init():
        v1_ref[...] = jnp.zeros_like(v1_ref)
        v2_ref[...] = jnp.zeros_like(v2_ref)
        v3_ref[...] = jnp.zeros_like(v3_ref)

    B, _ = v1_ref.shape
    TT = x_ref.shape[0] // B          # time steps in this block (static)

    one = jnp.float32(1.0)
    zero = jnp.float32(0.0)

    # --- stage 1: Linear (+ folded BN) is state-free -> one big matmul over the
    # whole time block (M = TT*B rows instead of M = B). ---
    h1_all = jnp.dot(x_ref[...].astype(jnp.bfloat16), w1_ref[...],
                     preferred_element_type=jnp.float32) + b1_ref[...]

    # Resident weights / biases, loaded once per block.
    w2 = w2_ref[...]
    b2 = b2_ref[...]
    w3 = w3_ref[...]
    b3 = b3_ref[...]

    # Membrane state: single load per block, single store per block.
    v1 = v1_ref[...]
    v2 = v2_ref[...]
    v3 = v3_ref[...]

    for i in range(TT):               # static trip count -> fully unrolled
        r = i * B

        # --- stage 1 IF neuron ---
        v1 = v1 + h1_all[r:r + B, :]
        f1 = v1 >= V_TH
        s1 = jnp.where(f1, one, zero)
        v1 = jnp.where(f1, zero, v1)          # hard reset to v_reset = 0

        # --- stage 2: Linear (+ folded BN) -> IF neuron ---
        h2 = jnp.dot(s1.astype(jnp.bfloat16), w2,
                     preferred_element_type=jnp.float32) + b2
        v2 = v2 + h2
        f2 = v2 >= V_TH
        s2 = jnp.where(f2, one, zero)
        v2 = jnp.where(f2, zero, v2)

        # --- stage 3: plain Linear (lin), then IF spikes; both are outputs ---
        lin = jnp.dot(s2.astype(jnp.bfloat16), w3,
                      preferred_element_type=jnp.float32) + b3
        v3 = v3 + lin
        f3 = v3 >= V_TH
        s3 = jnp.where(f3, one, zero)
        v3 = jnp.where(f3, zero, v3)

        spk_ref[r:r + B, :] = s3
        lin_ref[r:r + B, :] = lin

    v1_ref[...] = v1
    v2_ref[...] = v2
    v3_ref[...] = v3


def projector_ssl(x, params, *, time_tile=None, vmem_limit_bytes=None):
    T, B, C = x.shape
    H = 3 * C                          # logical hidden size of the module
    Hp = params["w1t"].shape[1]        # lane-padded hidden size (multiple of 128)
    assert params["w1t"].shape[0] == C

    if time_tile is None:
        # Target ~256 MXU rows per block (128 is already enough on v5e).
        tt = max(1, min(T, 256 // max(B, 1)))
        while T % tt:
            tt -= 1
        time_tile = tt
    TT = time_tile
    assert T % TT == 0
    rows = TT * B
    assert rows % 8 == 0 or rows == T * B, "TT*B should be a multiple of 8 sublanes"

    # Time-major 2-D slabs: row index = t*B + b.  Lane-dense outputs [T*B, Hp].
    x2d = x.reshape(T * B, C)

    grid_spec = pltpu.PrefetchScalarGridSpec(
        num_scalar_prefetch=0,
        grid=(T // TT,),
        in_specs=[
            pl.BlockSpec((rows, C), lambda t: (t, 0)),   # x block (TT time steps)
            pl.BlockSpec((C, Hp), lambda t: (0, 0)),     # W1^T (BN folded, bf16)
            pl.BlockSpec((1, Hp), lambda t: (0, 0)),     # b1   (BN folded, f32)
            pl.BlockSpec((Hp, Hp), lambda t: (0, 0)),    # W2^T (BN folded, bf16)
            pl.BlockSpec((1, Hp), lambda t: (0, 0)),     # b2
            pl.BlockSpec((Hp, Hp), lambda t: (0, 0)),    # W3^T (bf16)
            pl.BlockSpec((1, Hp), lambda t: (0, 0)),     # b3
        ],
        out_specs=[
            pl.BlockSpec((rows, Hp), lambda t: (t, 0)),  # spikes
            pl.BlockSpec((rows, Hp), lambda t: (t, 0)),  # lin
        ],
        scratch_shapes=[pltpu.VMEM((B, Hp), jnp.float32)] * 3,  # membrane v1, v2, v3
    )

    compiler_kwargs = dict(dimension_semantics=("arbitrary",))  # time is sequential
    if vmem_limit_bytes is not None:
        compiler_kwargs["vmem_limit_bytes"] = vmem_limit_bytes

    spk2d, lin2d = pl.pallas_call(
        projector_ssl_kernel,
        out_shape=(jax.ShapeDtypeStruct((T * B, Hp), jnp.float32),
                   jax.ShapeDtypeStruct((T * B, Hp), jnp.float32)),
        grid_spec=grid_spec,
        compiler_params=pltpu.CompilerParams(**compiler_kwargs),
    )(x2d, params["w1t"], params["b1"], params["w2t"], params["b2"],
      params["w3t"], params["b3"])

    spk = spk2d.reshape(T, B, Hp)[..., :H]
    lin = lin2d.reshape(T, B, Hp)[..., :H]
    return spk, lin


# ---------------- parameter construction (deterministic, synthetic) -----------

def _round_up(n, m):
    return ((n + m - 1) // m) * m


def _fold_bn(w, b, gamma, beta, mean, var, eps=1e-5):
    """Fold eval-mode BatchNorm1d into the preceding Linear. Returns (W^T_eff, b_eff)."""
    scale = gamma / jnp.sqrt(var + eps)
    wt_eff = w.T * scale[None, :]
    b_eff = (b - mean) * scale + beta
    return wt_eff, b_eff


def _pad_wt(wt, k_pad, n_pad):
    k, n = wt.shape
    return jnp.zeros((k_pad, n_pad), jnp.float32).at[:k, :n].set(wt)


def _pad_bias(b, n_pad, fill):
    n = b.shape[0]
    return jnp.full((n_pad,), fill, jnp.float32).at[:n].set(b).reshape(1, n_pad)


def make_params(key, in_channels):
    C, H = in_channels, 3 * in_channels
    Hp = _round_up(H, LANE)
    ks = jax.random.split(key, 10)

    def linear(kw, kb, fan_in, fan_out):
        bound = 1.0 / np.sqrt(fan_in)
        w = jax.random.uniform(kw, (fan_out, fan_in), jnp.float32, -bound, bound)
        b = jax.random.uniform(kb, (fan_out,), jnp.float32, -bound, bound)
        return w, b

    def bn(kg, kb, n):
        gamma = 1.0 + 0.1 * jax.random.normal(kg, (n,), jnp.float32)
        beta = 0.1 * jax.random.normal(kb, (n,), jnp.float32)
        mean = jnp.zeros((n,), jnp.float32)    # fresh running stats (eval mode)
        var = jnp.ones((n,), jnp.float32)
        return gamma, beta, mean, var

    w1, b1 = linear(ks[0], ks[1], C, H)
    w2, b2 = linear(ks[2], ks[3], H, H)
    w3, b3 = linear(ks[4], ks[5], H, H)
    bn1 = bn(ks[6], ks[7], H)
    bn2 = bn(ks[8], ks[9], H)

    w1t, b1e = _fold_bn(w1, b1, *bn1)
    w2t, b2e = _fold_bn(w2, b2, *bn2)

    # bf16 weights (lossless for spike inputs, halves VMEM/DMA bytes, native MXU
    # dtype); biases f32.  Padded bias lanes = NEG_PAD so they never spike.
    return {
        "w1t": _pad_wt(w1t, C, Hp).astype(jnp.bfloat16),
        "b1": _pad_bias(b1e, Hp, NEG_PAD),
        "w2t": _pad_wt(w2t, Hp, Hp).astype(jnp.bfloat16),
        "b2": _pad_bias(b2e, Hp, NEG_PAD),
        "w3t": _pad_wt(w3.T, Hp, Hp).astype(jnp.bfloat16),
        "b3": _pad_bias(b3, Hp, 0.0),
    }


# ---------------- pure-JAX reference (same folded/padded params) --------------

def reference(x, params):
    T, B, C = x.shape
    H = 3 * C
    w1, b1 = params["w1t"], params["b1"]
    w2, b2 = params["w2t"], params["b2"]
    w3, b3 = params["w3t"], params["b3"]
    Hp = w1.shape[1]

    def step(carry, x_t):
        v1, v2, v3 = carry
        h1 = jnp.dot(x_t.astype(jnp.bfloat16), w1,
                     preferred_element_type=jnp.float32) + b1
        v1 = v1 + h1
        s1 = jnp.where(v1 >= V_TH, 1.0, 0.0).astype(jnp.float32)
        v1 = jnp.where(v1 >= V_TH, 0.0, v1)

        h2 = jnp.dot(s1.astype(jnp.bfloat16), w2,
                     preferred_element_type=jnp.float32) + b2
        v2 = v2 + h2
        s2 = jnp.where(v2 >= V_TH, 1.0, 0.0).astype(jnp.float32)
        v2 = jnp.where(v2 >= V_TH, 0.0, v2)

        lin = jnp.dot(s2.astype(jnp.bfloat16), w3,
                      preferred_element_type=jnp.float32) + b3
        v3 = v3 + lin
        s3 = jnp.where(v3 >= V_TH, 1.0, 0.0).astype(jnp.float32)
        v3 = jnp.where(v3 >= V_TH, 0.0, v3)
        return (v1, v2, v3), (s3, lin)

    init = tuple(jnp.zeros((B, Hp), jnp.float32) for _ in range(3))
    _, (spk, lin) = jax.lax.scan(step, init, x)
    return spk[..., :H], lin[..., :H]


if __name__ == "__main__":
    # Small shapes: 8 time steps, batch 8 (sublane-aligned), in_channels 32
    # (hidden = 96, lane-padded to 128 inside the kernel).
    T, B, C = 8, 8, 32
    key = jax.random.PRNGKey(0)
    kx, kp = jax.random.split(key)
    x = jax.random.normal(kx, (T, B, C), jnp.float32)
    params = make_params(kp, C)

    # time_tile=4 -> 2 grid steps, exercising the membrane state carried across
    # grid iterations in VMEM scratch.
    spk, lin = projector_ssl(x, params, time_tile=4)
    jax.block_until_ready((spk, lin))

    spk_ref, lin_ref = reference(x, params)
    np.testing.assert_allclose(np.asarray(lin), np.asarray(lin_ref),
                               rtol=1e-4, atol=1e-4)
    np.testing.assert_array_equal(np.asarray(spk), np.asarray(spk_ref))

    print("KERNEL_OK")
</pallas_src>

<mosaic_0001>
module attributes {stable_mosaic.version = 11 : i64} {
  func.func @projector_ssl_kernel(%arg0: i32, %arg1: memref<32x32xf32, #tpu.memory_space<vmem>>, %arg2: memref<32x128xbf16, #tpu.memory_space<vmem>>, %arg3: memref<1x128xf32, #tpu.memory_space<vmem>>, %arg4: memref<128x128xbf16, #tpu.memory_space<vmem>>, %arg5: memref<1x128xf32, #tpu.memory_space<vmem>>, %arg6: memref<128x128xbf16, #tpu.memory_space<vmem>>, %arg7: memref<1x128xf32, #tpu.memory_space<vmem>>, %arg8: memref<32x128xf32, #tpu.memory_space<vmem>>, %arg9: memref<32x128xf32, #tpu.memory_space<vmem>>, %arg10: memref<8x128xf32, #tpu.memory_space<vmem>>, %arg11: memref<8x128xf32, #tpu.memory_space<vmem>>, %arg12: memref<8x128xf32, #tpu.memory_space<vmem>>) attributes {dimension_semantics = [#tpu.dimension_semantics<arbitrary>], iteration_bounds = array<i64: 2>, scalar_prefetch = 0 : i64, scratch_operands = 3 : i64, tpu.core_type = #tpu.core_type<tc>, window_params = [{transform_indices = @transform_0, window_bounds = array<i64: 32, 32>}, {pipeline_mode = #tpu.pipeline_mode<synchronous>, transform_indices = @transform_1, window_bounds = array<i64: 32, 128>}, {pipeline_mode = #tpu.pipeline_mode<synchronous>, transform_indices = @transform_2, window_bounds = array<i64: 1, 128>}, {pipeline_mode = #tpu.pipeline_mode<synchronous>, transform_indices = @transform_3, window_bounds = array<i64: 128, 128>}, {pipeline_mode = #tpu.pipeline_mode<synchronous>, transform_indices = @transform_4, window_bounds = array<i64: 1, 128>}, {pipeline_mode = #tpu.pipeline_mode<synchronous>, transform_indices = @transform_5, window_bounds = array<i64: 128, 128>}, {pipeline_mode = #tpu.pipeline_mode<synchronous>, transform_indices = @transform_6, window_bounds = array<i64: 1, 128>}, {transform_indices = @transform_7, window_bounds = array<i64: 32, 128>}, {transform_indices = @transform_8, window_bounds = array<i64: 32, 128>}]} {
    %c0_i32 = arith.constant 0 : i32
    %0 = arith.cmpi eq, %arg0, %c0_i32 : i32
    %1 = arith.extui %0 : i1 to i32
    %c0_i32_0 = arith.constant 0 : i32
    %2 = arith.cmpi ne, %1, %c0_i32_0 : i32
    scf.if %2 {
      %cst_95 = arith.constant 0.000000e+00 : f32
      %160 = vector.broadcast %cst_95 : f32 to vector<8x128xf32>
      %c0_96 = arith.constant 0 : index
      %c0_97 = arith.constant 0 : index
      %161 = vector.load %arg10[%c0_96, %c0_97] : memref<8x128xf32, #tpu.memory_space<vmem>>, vector<8x128xf32>
      tpu.vector_store %arg10[%c0_96, %c0_97], %160 {strides = array<i32>} : memref<8x128xf32, #tpu.memory_space<vmem>>, vector<8x128xf32>,
      %cst_98 = arith.constant 0.000000e+00 : f32
      %162 = vector.broadcast %cst_98 : f32 to vector<8x128xf32>
      %c0_99 = arith.constant 0 : index
      %c0_100 = arith.constant 0 : index
      %163 = vector.load %arg11[%c0_99, %c0_100] : memref<8x128xf32, #tpu.memory_space<vmem>>, vector<8x128xf32>
      tpu.vector_store %arg11[%c0_99, %c0_100], %162 {strides = array<i32>} : memref<8x128xf32, #tpu.memory_space<vmem>>, vector<8x128xf32>,
      %cst_101 = arith.constant 0.000000e+00 : f32
      %164 = vector.broadcast %cst_101 : f32 to vector<8x128xf32>
      %c0_102 = arith.constant 0 : index
      %c0_103 = arith.constant 0 : index
      %165 = vector.load %arg12[%c0_102, %c0_103] : memref<8x128xf32, #tpu.memory_space<vmem>>, vector<8x128xf32>
      tpu.vector_store %arg12[%c0_102, %c0_103], %164 {strides = array<i32>} : memref<8x128xf32, #tpu.memory_space<vmem>>, vector<8x128xf32>,
    } else {
    }
    %c0 = arith.constant 0 : index
    %c0_1 = arith.constant 0 : index
    %3 = vector.load %arg1[%c0, %c0_1] : memref<32x32xf32, #tpu.memory_space<vmem>>, vector<32x32xf32>
    %4 = arith.truncf %3 : vector<32x32xf32> to vector<32x32xbf16>
    %c0_2 = arith.constant 0 : index
    %c0_3 = arith.constant 0 : index
    %5 = vector.load %arg2[%c0_2, %c0_3] : memref<32x128xbf16, #tpu.memory_space<vmem>>, vector<32x128xbf16>
    %cst = arith.constant dense<0.000000e+00> : vector<32x128xf32>
    %6 = tpu.matmul %4, %5, %cst {dimension_numbers = #tpu.dot_dimension_numbers<[1], [0], [0], [1], [0, 0, 1, 1], [], []>} : vector<32x32xbf16>, vector<32x128xbf16>, vector<32x128xf32> -> vector<32x128xf32>
    %c0_4 = arith.constant 0 : index
    %c0_5 = arith.constant 0 : index
    %7 = vector.load %arg3[%c0_4, %c0_5] : memref<1x128xf32, #tpu.memory_space<vmem>>, vector<1x128xf32>
    %8 = vector.broadcast %7 : vector<1x128xf32> to vector<32x128xf32>
    %9 = arith.addf %6, %8 : vector<32x128xf32>
    %c0_6 = arith.constant 0 : index
    %c0_7 = arith.constant 0 : index
    %10 = vector.load %arg4[%c0_6, %c0_7] : memref<128x128xbf16, #tpu.memory_space<vmem>>, vector<128x128xbf16>
    %c0_8 = arith.constant 0 : index
    %c0_9 = arith.constant 0 : index
    %11 = vector.load %arg5[%c0_8, %c0_9] : memref<1x128xf32, #tpu.memory_space<vmem>>, vector<1x128xf32>
    %c0_10 = arith.constant 0 : index
    %c0_11 = arith.constant 0 : index
    %12 = vector.load %arg6[%c0_10, %c0_11] : memref<128x128xbf16, #tpu.memory_space<vmem>>, vector<128x128xbf16>
    %c0_12 = arith.constant 0 : index
    %c0_13 = arith.constant 0 : index
    %13 = vector.load %arg7[%c0_12, %c0_13] : memref<1x128xf32, #tpu.memory_space<vmem>>, vector<1x128xf32>
    %c0_14 = arith.constant 0 : index
    %c0_15 = arith.constant 0 : index
    %14 = vector.load %arg10[%c0_14, %c0_15] : memref<8x128xf32, #tpu.memory_space<vmem>>, vector<8x128xf32>
    %c0_16 = arith.constant 0 : index
    %c0_17 = arith.constant 0 : index
    %15 = vector.load %arg11[%c0_16, %c0_17] : memref<8x128xf32, #tpu.memory_space<vmem>>, vector<8x128xf32>
    %c0_18 = arith.constant 0 : index
    %c0_19 = arith.constant 0 : index
    %16 = vector.load %arg12[%c0_18, %c0_19] : memref<8x128xf32, #tpu.memory_space<vmem>>, vector<8x128xf32>
    %17 = vector.extract_strided_slice %9 {offsets = [0, 0], sizes = [8, 128], strides = [1, 1]} : vector<32x128xf32> to vector<8x128xf32>
    %18 = arith.addf %14, %17 : vector<8x128xf32>
    %cst_20 = arith.constant 1.000000e+00 : f32
    %19 = vector.broadcast %cst_20 : f32 to vector<8x128xf32>
    %20 = arith.cmpf oge, %18, %19 : vector<8x128xf32>
    %cst_21 = arith.constant 1.000000e+00 : f32
    %cst_22 = arith.constant 0.000000e+00 : f32
    %21 = vector.broadcast %cst_21 : f32 to vector<8x128xf32>
    %22 = vector.broadcast %cst_22 : f32 to vector<8x128xf32>
    %23 = arith.select %20, %21, %22 : vector<8x128xi1>, vector<8x128xf32>
    %cst_23 = arith.constant 0.000000e+00 : f32
    %24 = vector.broadcast %cst_23 : f32 to vector<8x128xf32>
    %25 = arith.select %20, %24, %18 : vector<8x128xi1>, vector<8x128xf32>
    %26 = arith.truncf %23 : vector<8x128xf32> to vector<8x128xbf16>
    %cst_24 = arith.constant dense<0.000000e+00> : vector<8x128xf32>
    %27 = tpu.matmul %26, %10, %cst_24 {dimension_numbers = #tpu.dot_dimension_numbers<[1], [0], [0], [1], [0, 0, 1, 1], [], []>} : vector<8x128xbf16>, vector<128x128xbf16>, vector<8x128xf32> -> vector<8x128xf32>
    %28 = vector.broadcast %11 : vector<1x128xf32> to vector<8x128xf32>
    %29 = arith.addf %27, %28 : vector<8x128xf32>
    %30 = arith.addf %15, %29 : vector<8x128xf32>
    %cst_25 = arith.constant 1.000000e+00 : f32
    %31 = vector.broadcast %cst_25 : f32 to vector<8x128xf32>
    %32 = arith.cmpf oge, %30, %31 : vector<8x128xf32>
    %cst_26 = arith.constant 1.000000e+00 : f32
    %cst_27 = arith.constant 0.000000e+00 : f32
    %33 = vector.broadcast %cst_26 : f32 to vector<8x128xf32>
    %34 = vector.broadcast %cst_27 : f32 to vector<8x128xf32>
    %35 = arith.select %32, %33, %34 : vector<8x128xi1>, vector<8x128xf32>
    %cst_28 = arith.constant 0.000000e+00 : f32
    %36 = vector.broadcast %cst_28 : f32 to vector<8x128xf32>
    %37 = arith.select %32, %36, %30 : vector<8x128xi1>, vector<8x128xf32>
    %38 = arith.truncf %35 : vector<8x128xf32> to vector<8x128xbf16>
    %cst_29 = arith.constant dense<0.000000e+00> : vector<8x128xf32>
    %39 = tpu.matmul %38, %12, %cst_29 {dimension_numbers = #tpu.dot_dimension_numbers<[1], [0], [0], [1], [0, 0, 1, 1], [], []>} : vector<8x128xbf16>, vector<128x128xbf16>, vector<8x128xf32> -> vector<8x128xf32>
    %40 = vector.broadcast %13 : vector<1x128xf32> to vector<8x128xf32>
    %41 = arith.addf %39, %40 : vector<8x128xf32>
    %42 = arith.addf %16, %41 : vector<8x128xf32>
    %cst_30 = arith.constant 1.000000e+00 : f32
    %43 = vector.broadcast %cst_30 : f32 to vector<8x128xf32>
    %44 = arith.cmpf oge, %42, %43 : vector<8x128xf32>
    %cst_31 = arith.constant 1.000000e+00 : f32
    %cst_32 = arith.constant 0.000000e+00 : f32
    %45 = vector.broadcast %cst_31 : f32 to vector<8x128xf32>
    %46 = vector.broadcast %cst_32 : f32 to vector<8x128xf32>
    %47 = arith.select %44, %45, %46 : vector<8x128xi1>, vector<8x128xf32>
    %cst_33 = arith.constant 0.000000e+00 : f32
    %48 = vector.broadcast %cst_33 : f32 to vector<8x128xf32>
    %49 = arith.select %44, %48, %42 : vector<8x128xi1>, vector<8x128xf32>
    %c0_34 = arith.constant 0 : index
    %c0_35 = arith.constant 0 : index
    %50 = vector.load %arg8[%c0_34, %c0_35] : memref<32x128xf32, #tpu.memory_space<vmem>>, vector<8x128xf32>
    tpu.vector_store %arg8[%c0_34, %c0_35], %47 {strides = array<i32>} : memref<32x128xf32, #tpu.memory_space<vmem>>, vector<8x128xf32>,
    %c0_36 = arith.constant 0 : index
    %c0_37 = arith.constant 0 : index
    %51 = vector.load %arg9[%c0_36, %c0_37] : memref<32x128xf32, #tpu.memory_space<vmem>>, vector<8x128xf32>
    tpu.vector_store %arg9[%c0_36, %c0_37], %41 {strides = array<i32>} : memref<32x128xf32, #tpu.memory_space<vmem>>, vector<8x128xf32>,
    %52 = vector.extract_strided_slice %9 {offsets = [8, 0], sizes = [8, 128], strides = [1, 1]} : vector<32x128xf32> to vector<8x128xf32>
    %53 = arith.addf %25, %52 : vector<8x128xf32>
    %cst_38 = arith.constant 1.000000e+00 : f32
    %54 = vector.broadcast %cst_38 : f32 to vector<8x128xf32>
    %55 = arith.cmpf oge, %53, %54 : vector<8x128xf32>
    %cst_39 = arith.constant 1.000000e+00 : f32
    %cst_40 = arith.constant 0.000000e+00 : f32
    %56 = vector.broadcast %cst_39 : f32 to vector<8x128xf32>
    %57 = vector.broadcast %cst_40 : f32 to vector<8x128xf32>
    %58 = arith.select %55, %56, %57 : vector<8x128xi1>, vector<8x128xf32>
    %cst_41 = arith.constant 0.000000e+00 : f32
    %59 = vector.broadcast %cst_41 : f32 to vector<8x128xf32>
    %60 = arith.select %55, %59, %53 : vector<8x128xi1>, vector<8x128xf32>
    %61 = arith.truncf %58 : vector<8x128xf32> to vector<8x128xbf16>
    %cst_42 = arith.constant dense<0.000000e+00> : vector<8x128xf32>
    %62 = tpu.matmul %61, %10, %cst_42 {dimension_numbers = #tpu.dot_dimension_numbers<[1], [0], [0], [1], [0, 0, 1, 1], [], []>} : vector<8x128xbf16>, vector<128x128xbf16>, vector<8x128xf32> -> vector<8x128xf32>
    %63 = vector.broadcast %11 : vector<1x128xf32> to vector<8x128xf32>
    %64 = arith.addf %62, %63 : vector<8x128xf32>
    %65 = arith.addf %37, %64 : vector<8x128xf32>
    %cst_43 = arith.constant 1.000000e+00 : f32
    %66 = vector.broadcast %cst_43 : f32 to vector<8x128xf32>
    %67 = arith.cmpf oge, %65, %66 : vector<8x128xf32>
    %cst_44 = arith.constant 1.000000e+00 : f32
    %cst_45 = arith.constant 0.000000e+00 : f32
    %68 = vector.broadcast %cst_44 : f32 to vector<8x128xf32>
    %69 = vector.broadcast %cst_45 : f32 to vector<8x128xf32>
    %70 = arith.select %67, %68, %69 : vector<8x128xi1>, vector<8x128xf32>
    %cst_46 = arith.constant 0.000000e+00 : f32
    %71 = vector.broadcast %cst_46 : f32 to vector<8x128xf32>
    %72 = arith.select %67, %71, %65 : vector<8x128xi1>, vector<8x128xf32>
    %73 = arith.truncf %70 : vector<8x128xf32> to vector<8x128xbf16>
    %cst_47 = arith.constant dense<0.000000e+00> : vector<8x128xf32>
    %74 = tpu.matmul %73, %12, %cst_47 {dimension_numbers = #tpu.dot_dimension_numbers<[1], [0], [0], [1], [0, 0, 1, 1], [], []>} : vector<8x128xbf16>, vector<128x128xbf16>, vector<8x128xf32> -> vector<8x128xf32>
    %75 = vector.broadcast %13 : vector<1x128xf32> to vector<8x128xf32>
    %76 = arith.addf %74, %75 : vector<8x128xf32>
    %77 = arith.addf %49, %76 : vector<8x128xf32>
    %cst_48 = arith.constant 1.000000e+00 : f32
    %78 = vector.broadcast %cst_48 : f32 to vector<8x128xf32>
    %79 = arith.cmpf oge, %77, %78 : vector<8x128xf32>
    %cst_49 = arith.constant 1.000000e+00 : f32
    %cst_50 = arith.constant 0.000000e+00 : f32
    %80 = vector.broadcast %cst_49 : f32 to vector<8x128xf32>
    %81 = vector.broadcast %cst_50 : f32 to vector<8x128xf32>
    %82 = arith.select %79, %80, %81 : vector<8x128xi1>, vector<8x128xf32>
    %cst_51 = arith.constant 0.000000e+00 : f32
    %83 = vector.broadcast %cst_51 : f32 to vector<8x128xf32>
    %84 = arith.select %79, %83, %77 : vector<8x128xi1>, vector<8x128xf32>
    %c8 = arith.constant 8 : index
    %c0_52 = arith.constant 0 : index
    %85 = vector.load %arg8[%c8, %c0_52] : memref<32x128xf32, #tpu.memory_space<vmem>>, vector<8x128xf32>
    tpu.vector_store %arg8[%c8, %c0_52], %82 {strides = array<i32>} : memref<32x128xf32, #tpu.memory_space<vmem>>, vector<8x128xf32>,
    %c8_53 = arith.constant 8 : index
    %c0_54 = arith.constant 0 : index
    %86 = vector.load %arg9[%c8_53, %c0_54] : memref<32x128xf32, #tpu.memory_space<vmem>>, vector<8x128xf32>
    tpu.vector_store %arg9[%c8_53, %c0_54], %76 {strides = array<i32>} : memref<32x128xf32, #tpu.memory_space<vmem>>, vector<8x128xf32>,
    %87 = vector.extract_strided_slice %9 {offsets = [16, 0], sizes = [8, 128], strides = [1, 1]} : vector<32x128xf32> to vector<8x128xf32>
    %88 = arith.addf %60, %87 : vector<8x128xf32>
    %cst_55 = arith.constant 1.000000e+00 : f32
    %89 = vector.broadcast %cst_55 : f32 to vector<8x128xf32>
    %90 = arith.cmpf oge, %88, %89 : vector<8x128xf32>
    %cst_56 = arith.constant 1.000000e+00 : f32
    %cst_57 = arith.constant 0.000000e+00 : f32
    %91 = vector.broadcast %cst_56 : f32 to vector<8x128xf32>
    %92 = vector.broadcast %cst_57 : f32 to vector<8x128xf32>
    %93 = arith.select %90, %91, %92 : vector<8x128xi1>, vector<8x128xf32>
    %cst_58 = arith.constant 0.000000e+00 : f32
    %94 = vector.broadcast %cst_58 : f32 to vector<8x128xf32>
    %95 = arith.select %90, %94, %88 : vector<8x128xi1>, vector<8x128xf32>
    %96 = arith.truncf %93 : vector<8x128xf32> to vector<8x128xbf16>
    %cst_59 = arith.constant dense<0.000000e+00> : vector<8x128xf32>
    %97 = tpu.matmul %96, %10, %cst_59 {dimension_numbers = #tpu.dot_dimension_numbers<[1], [0], [0], [1], [0, 0, 1, 1], [], []>} : vector<8x128xbf16>, vector<128x128xbf16>, vector<8x128xf32> -> vector<8x128xf32>
    %98 = vector.broadcast %11 : vector<1x128xf32> to vector<8x128xf32>
    %99 = arith.addf %97, %98 : vector<8x128xf32>
    %100 = arith.addf %72, %99 : vector<8x128xf32>
    %cst_60 = arith.constant 1.000000e+00 : f32
    %101 = vector.broadcast %cst_60 : f32 to vector<8x128xf32>
    %102 = arith.cmpf oge, %100, %101 : vector<8x128xf32>
    %cst_61 = arith.constant 1.000000e+00 : f32
    %cst_62 = arith.constant 0.000000e+00 : f32
    %103 = vector.broadcast %cst_61 : f32 to vector<8x128xf32>
    %104 = vector.broadcast %cst_62 : f32 to vector<8x128xf32>
    %105 = arith.select %102, %103, %104 : vector<8x128xi1>, vector<8x128xf32>
    %cst_63 = arith.constant 0.000000e+00 : f32
    %106 = vector.broadcast %cst_63 : f32 to vector<8x128xf32>
    %107 = arith.select %102, %106, %100 : vector<8x128xi1>, vector<8x128xf32>
    %108 = arith.truncf %105 : vector<8x128xf32> to vector<8x128xbf16>
    %cst_64 = arith.constant dense<0.000000e+00> : vector<8x128xf32>
    %109 = tpu.matmul %108, %12, %cst_64 {dimension_numbers = #tpu.dot_dimension_numbers<[1], [0], [0], [1], [0, 0, 1, 1], [], []>} : vector<8x128xbf16>, vector<128x128xbf16>, vector<8x128xf32> -> vector<8x128xf32>
    %110 = vector.broadcast %13 : vector<1x128xf32> to vector<8x128xf32>
    %111 = arith.addf %109, %110 : vector<8x128xf32>
    %112 = arith.addf %84, %111 : vector<8x128xf32>
    %cst_65 = arith.constant 1.000000e+00 : f32
    %113 = vector.broadcast %cst_65 : f32 to vector<8x128xf32>
    %114 = arith.cmpf oge, %112, %113 : vector<8x128xf32>
    %cst_66 = arith.constant 1.000000e+00 : f32
    %cst_67 = arith.constant 0.000000e+00 : f32
    %115 = vector.broadcast %cst_66 : f32 to vector<8x128xf32>
    %116 = vector.broadcast %cst_67 : f32 to vector<8x128xf32>
    %117 = arith.select %114, %115, %116 : vector<8x128xi1>, vector<8x128xf32>
    %cst_68 = arith.constant 0.000000e+00 : f32
    %118 = vector.broadcast %cst_68 : f32 to vector<8x128xf32>
    %119 = arith.select %114, %118, %112 : vector<8x128xi1>, vector<8x128xf32>
    %c16 = arith.constant 16 : index
    %c0_69 = arith.constant 0 : index
    %120 = vector.load %arg8[%c16, %c0_69] : memref<32x128xf32, #tpu.memory_space<vmem>>, vector<8x128xf32>
    tpu.vector_store %arg8[%c16, %c0_69], %117 {strides = array<i32>} : memref<32x128xf32, #tpu.memory_space<vmem>>, vector<8x128xf32>,
    %c16_70 = arith.constant 16 : index
    %c0_71 = arith.constant 0 : index
    %121 = vector.load %arg9[%c16_70, %c0_71] : memref<32x128xf32, #tpu.memory_space<vmem>>, vector<8x128xf32>
    tpu.vector_store %arg9[%c16_70, %c0_71], %111 {strides = array<i32>} : memref<32x128xf32, #tpu.memory_space<vmem>>, vector<8x128xf32>,
    %122 = vector.extract_strided_slice %9 {offsets = [24, 0], sizes = [8, 128], strides = [1, 1]} : vector<32x128xf32> to vector<8x128xf32>
    %123 = arith.addf %95, %122 : vector<8x128xf32>
    %cst_72 = arith.constant 1.000000e+00 : f32
    %124 = vector.broadcast %cst_72 : f32 to vector<8x128xf32>
    %125 = arith.cmpf oge, %123, %124 : vector<8x128xf32>
    %cst_73 = arith.constant 1.000000e+00 : f32
    %cst_74 = arith.constant 0.000000e+00 : f32
    %126 = vector.broadcast %cst_73 : f32 to vector<8x128xf32>
    %127 = vector.broadcast %cst_74 : f32 to vector<8x128xf32>
    %128 = arith.select %125, %126, %127 : vector<8x128xi1>, vector<8x128xf32>
    %cst_75 = arith.constant 0.000000e+00 : f32
    %129 = vector.broadcast %cst_75 : f32 to vector<8x128xf32>
    %130 = arith.select %125, %129, %123 : vector<8x128xi1>, vector<8x128xf32>
    %131 = arith.truncf %128 : vector<8x128xf32> to vector<8x128xbf16>
    %cst_76 = arith.constant dense<0.000000e+00> : vector<8x128xf32>
    %132 = tpu.matmul %131, %10, %cst_76 {dimension_numbers = #tpu.dot_dimension_numbers<[1], [0], [0], [1], [0, 0, 1, 1], [], []>} : vector<8x128xbf16>, vector<128x128xbf16>, vector<8x128xf32> -> vector<8x128xf32>
    %133 = vector.broadcast %11 : vector<1x128xf32> to vector<8x128xf32>
    %134 = arith.addf %132, %133 : vector<8x128xf32>
    %135 = arith.addf %107, %134 : vector<8x128xf32>
    %cst_77 = arith.constant 1.000000e+00 : f32
    %136 = vector.broadcast %cst_77 : f32 to vector<8x128xf32>
    %137 = arith.cmpf oge, %135, %136 : vector<8x128xf32>
    %cst_78 = arith.constant 1.000000e+00 : f32
    %cst_79 = arith.constant 0.000000e+00 : f32
    %138 = vector.broadcast %cst_78 : f32 to vector<8x128xf32>
    %139 = vector.broadcast %cst_79 : f32 to vector<8x128xf32>
    %140 = arith.select %137, %138, %139 : vector<8x128xi1>, vector<8x128xf32>
    %cst_80 = arith.constant 0.000000e+00 : f32
    %141 = vector.broadcast %cst_80 : f32 to vector<8x128xf32>
    %142 = arith.select %137, %141, %135 : vector<8x128xi1>, vector<8x128xf32>
    %143 = arith.truncf %140 : vector<8x128xf32> to vector<8x128xbf16>
    %cst_81 = arith.constant dense<0.000000e+00> : vector<8x128xf32>
    %144 = tpu.matmul %143, %12, %cst_81 {dimension_numbers = #tpu.dot_dimension_numbers<[1], [0], [0], [1], [0, 0, 1, 1], [], []>} : vector<8x128xbf16>, vector<128x128xbf16>, vector<8x128xf32> -> vector<8x128xf32>
    %145 = vector.broadcast %13 : vector<1x128xf32> to vector<8x128xf32>
    %146 = arith.addf %144, %145 : vector<8x128xf32>
    %147 = arith.addf %119, %146 : vector<8x128xf32>
    %cst_82 = arith.constant 1.000000e+00 : f32
    %148 = vector.broadcast %cst_82 : f32 to vector<8x128xf32>
    %149 = arith.cmpf oge, %147, %148 : vector<8x128xf32>
    %cst_83 = arith.constant 1.000000e+00 : f32
    %cst_84 = arith.constant 0.000000e+00 : f32
    %150 = vector.broadcast %cst_83 : f32 to vector<8x128xf32>
    %151 = vector.broadcast %cst_84 : f32 to vector<8x128xf32>
    %152 = arith.select %149, %150, %151 : vector<8x128xi1>, vector<8x128xf32>
    %cst_85 = arith.constant 0.000000e+00 : f32
    %153 = vector.broadcast %cst_85 : f32 to vector<8x128xf32>
    %154 = arith.select %149, %153, %147 : vector<8x128xi1>, vector<8x128xf32>
    %c24 = arith.constant 24 : index
    %c0_86 = arith.constant 0 : index
    %155 = vector.load %arg8[%c24, %c0_86] : memref<32x128xf32, #tpu.memory_space<vmem>>, vector<8x128xf32>
    tpu.vector_store %arg8[%c24, %c0_86], %152 {strides = array<i32>} : memref<32x128xf32, #tpu.memory_space<vmem>>, vector<8x128xf32>,
    %c24_87 = arith.constant 24 : index
    %c0_88 = arith.constant 0 : index
    %156 = vector.load %arg9[%c24_87, %c0_88] : memref<32x128xf32, #tpu.memory_space<vmem>>, vector<8x128xf32>
    tpu.vector_store %arg9[%c24_87, %c0_88], %146 {strides = array<i32>} : memref<32x128xf32, #tpu.memory_space<vmem>>, vector<8x128xf32>,
    %c0_89 = arith.constant 0 : index
    %c0_90 = arith.constant 0 : index
    %157 = vector.load %arg10[%c0_89, %c0_90] : memref<8x128xf32, #tpu.memory_space<vmem>>, vector<8x128xf32>
    tpu.vector_store %arg10[%c0_89, %c0_90], %130 {strides = array<i32>} : memref<8x128xf32, #tpu.memory_space<vmem>>, vector<8x128xf32>,
    %c0_91 = arith.constant 0 : index
    %c0_92 = arith.constant 0 : index
    %158 = vector.load %arg11[%c0_91, %c0_92] : memref<8x128xf32, #tpu.memory_space<vmem>>, vector<8x128xf32>
    tpu.vector_store %arg11[%c0_91, %c0_92], %142 {strides = array<i32>} : memref<8x128xf32, #tpu.memory_space<vmem>>, vector<8x128xf32>,
    %c0_93 = arith.constant 0 : index
    %c0_94 = arith.constant 0 : index
    %159 = vector.load %arg12[%c0_93, %c0_94] : memref<8x128xf32, #tpu.memory_space<vmem>>, vector<8x128xf32>
    tpu.vector_store %arg12[%c0_93, %c0_94], %154 {strides = array<i32>} : memref<8x128xf32, #tpu.memory_space<vmem>>, vector<8x128xf32>,
    return
  }
  func.func @transform_0(%arg0: i32) -> (i32, i32) {
    %c0_i32 = arith.constant 0 : i32
    %c0_i32_0 = arith.constant 0 : i32
    return %arg0, %c0_i32 : i32, i32
  }
  func.func @transform_1(%arg0: i32) -> (i32, i32) {
    %c0_i32 = arith.constant 0 : i32
    %c0_i32_0 = arith.constant 0 : i32
    %c0_i32_1 = arith.constant 0 : i32
    return %c0_i32, %c0_i32_0 : i32, i32
  }
  func.func @transform_2(%arg0: i32) -> (i32, i32) {
    %c0_i32 = arith.constant 0 : i32
    %c0_i32_0 = arith.constant 0 : i32
    %c0_i32_1 = arith.constant 0 : i32
    return %c0_i32, %c0_i32_0 : i32, i32
  }
  func.func @transform_3(%arg0: i32) -> (i32, i32) {
    %c0_i32 = arith.constant 0 : i32
    %c0_i32_0 = arith.constant 0 : i32
    %c0_i32_1 = arith.constant 0 : i32
    return %c0_i32, %c0_i32_0 : i32, i32
  }
  func.func @transform_4(%arg0: i32) -> (i32, i32) {
    %c0_i32 = arith.constant 0 : i32
    %c0_i32_0 = arith.constant 0 : i32
    %c0_i32_1 = arith.constant 0 : i32
    return %c0_i32, %c0_i32_0 : i32, i32
  }
  func.func @transform_5(%arg0: i32) -> (i32, i32) {
    %c0_i32 = arith.constant 0 : i32
    %c0_i32_0 = arith.constant 0 : i32
    %c0_i32_1 = arith.constant 0 : i32
    return %c0_i32, %c0_i32_0 : i32, i32
  }
  func.func @transform_6(%arg0: i32) -> (i32, i32) {
    %c0_i32 = arith.constant 0 : i32
    %c0_i32_0 = arith.constant 0 : i32
    %c0_i32_1 = arith.constant 0 : i32
    return %c0_i32, %c0_i32_0 : i32, i32
  }
  func.func @transform_7(%arg0: i32) -> (i32, i32) {
    %c0_i32 = arith.constant 0 : i32
    %c0_i32_0 = arith.constant 0 : i32
    return %arg0, %c0_i32 : i32, i32
  }
  func.func @transform_8(%arg0: i32) -> (i32, i32) {
    %c0_i32 = arith.constant 0 : i32
    %c0_i32_0 = arith.constant 0 : i32
    return %arg0, %c0_i32 : i32, i32
  }
}

</mosaic_0001>

<bundles_post_ra>
// kernel: tpu_custom_call.1
= control target key start
LH: loop header
LB: loop body
LE: loop exit
PB: predicated region body
PF: predicated region fallthrough
CT: control target
= control target key end

     0   :  { %14 = vsyncpa [#allocation6], 0  ;;  %s2095_s0 = inlined_call_operand.vmem [shape: f32[64,32], index: 0, kind: input, shape index: {}]   ;;  %s2096_s1 = inlined_call_operand.vmem [shape: bf16[32,128], index: 1, kind: input, shape index: {}]   ;;  %s2097_s2 = inlined_call_operand.vmem [shape: f32[1,128], index: 2, kind: input, shape index: {}]   ;;  %s2098_s3 = inlined_call_operand.vmem [shape: bf16[128,128], index: 3, kind: input, shape index: {}]   ;;  %s2099_s4 = inlined_call_operand.vmem [shape: f32[1,128], index: 4, kind: input, shape index: {}]   ;;  %s2100_s5 = inlined_call_operand.hbm [shape: bf16[128,128], index: 5, kind: input, shape index: {}]   ;;  %s2101_s6 = inlined_call_operand.vmem [shape: f32[1,128], index: 6, kind: input, shape index: {}]   ;;  %s2102_s7 = inlined_call_operand.hbm [shape: f32[64,128], index: 7, kind: output, shape index: {0}]   ;;  %s2103_s8 = inlined_call_operand.hbm [shape: f32[64,128], index: 8, kind: output, shape index: {1}]  }
   0x1   :  { %15 = vsyncpa [#allocation7], 0 }
   0x2   :  { %17 = vsyncpa [#allocation7 + $0x1], 0 }
   0x3   :  { %18 = vsyncpa [#allocation10], 0 }
   0x4   :  { %20 = vsyncpa [#allocation10 + $0x1], 0  ;;  %s1663_s27 = smov 0   ;;  %s1665_s28 = smov 0  }
   0x5   :  { %s1667_s29 = smov 0   ;;  %s1669_s30 = smov 0  }
   0x6 LB: > { %s1684_s9 = sadd.s32 4294967295, %s1605_s30   ;;  %s1100_s10 = sadd.s32 4294967294, %s1605_s30   ;;  %s1605_s30 = sphi %s1669_s30, %s2116_s30   ;;  %s1601_s29 = sphi %s1667_s29, %s2115_s29   ;;  %s1597_s28 = sphi %s1665_s28, %s2114_s28   ;;  %s1593_s27 = sphi %s1663_s27, %s2113_s27  }
   0x7   : > { %s1688_s11 = sadd.s32 1, %s1605_s30   ;;  %s185_s12 = sadd.s32 1, %s1601_s29 }
   0x8   : > { %s182_s13 = ssub.s32 %s1605_s30, %s1688_s11  ;;  %p195_p0 = scmp.ne.s32.totalorder %s1601_s29, %s1597_s28 }
   0x9   : > { %p183_p1 = scmp.eq.s32.totalorder %s182_s13, 0  ;;  %p196_p2 = scmp.eq.s32.totalorder %s1684_s9, 1 }
   0xa   : > { %p201_p3 = scmp.ne.s32.totalorder %s1597_s28, %s1593_s27  ;;  %p202_p4 = scmp.eq.s32.totalorder %s1100_s10, 1 }
   0xb   : > { %s1699_s14 = scalar_select %p183_p1, %s1601_s29, %s185_s12  }
   0xc   : > { %p1701_p5 = por %p196_p2, %p195_p0  ;;  %p1705_p6 = por %p202_p4, %p201_p3 }
   0xd   : > { %p1101_p7 = scmp.ge.s32.totalorder %s1605_s30, 1  ;;  %p235_p8 = scmp.lt.s32.totalorder %s1605_s30, 3 }
   0xe   : > { %s2106_s16 = scalar_select %p1705_p6, 1, 0 }
   0xf   : > { %p1423_p10 = scmp.eq.s32.totalorder %s1684_s9, 0  ;;  %p1713_p11 = pnand %p1101_p7, %p235_p8 }
  0x10   : > { %s1607_s18 = smov [#allocation5]  }
  0x11   : > { %s259_s19 = sshll.u32 %s1607_s18, 4  ;;  %p1412_p12 = pneg %p1713_p11  ;;  %s260_s19 = int_to_ptr.vmem [resolvable:$true] %s259_s19 }
  0x12   : > { %s1496_s20 = scalar_lea.vmem %s260_s19, 1024  ;;  %p1504_p4 = scmp.lt.s32.totalorder %s260_s19, %s260_s19 }
  0x13   : > { %p1413_p13 = pnand %p1423_p10, %p1412_p12  ;;  %p1497_p1 = scmp.ne.s32.totalorder %s260_s19, %s1496_s20 }
  0x14   : > { %p1505_p9 = scmp.lt.s32.totalorder %s1496_s20, %s1496_s20 }
  0x15   : > { %p1487_p0 = pneg %p1413_p13 }
  0x16   : > { %p1506_p6 = por %p1505_p9, %p1504_p4 }
  0x17   : > { %p1499_p2 = pnand %p1497_p1, %p1487_p0 }
  0x19   : > { %p1500_p3 = pneg %p1499_p2 }
  0x1b   : > { %p1507_p7 = pnand %p1506_p6, %p1500_p3 }
  0x1d   : > { %1510 = shalt.err (!%p1507_p7)
}
  0x1e   : > { %s1608_s21 = smov 64   ;;  %s1609_s22 = smov 4  }
  0x1f   : > { %1415 = dma.hbm_to_vmem [thread:$0]  (!%p1413_p13), %s2100_s5, 1024, %s260_s19, [#allocation6], %s1608_s21, %s1608_s21, %s1609_s22  }
  0x20   : > { %287 = sbr.rel (%p1713_p11) target bundleno = 790 (0x316), region = 48 }
  0x25   : > { %1580 = dma.done.wait (%p1423_p10), [#allocation6], 1024  }
  0x26   : > { %1582 = vsyncadd (%p1423_p10), [#allocation6], 4294966272  ;;  %s1731_s25 = sand.u32 1, %s1597_s28   ;;  %s1108_s26 = sshll.u32 %s1684_s9, 2 }
  0x27   : > { %s1106_s10 = sshll.u32 %s1731_s25, 5  ;;  %p327_p6 = scmp.lt.s32.totalorder %s1108_s26, 7 }
  0x28   : > { %s1738_s19 = scalar_lea.vmem [#allocation8], %s1106_s10  ;;  %s1740_s20 = scalar_lea.vmem [#allocation9], %s1106_s10 }
  0x29   : > { %s2118_s26 = smov (!%p327_p6, %s1108_s26), 7  ;;  %p2108_p8 = scmp.ne.s32.totalorder %s1684_s9, 0 }
  0x2a   : > { %s1109_s12 = sshll.u32 %s2118_s26, 3 }
  0x2b   : > { %s330_s17 = scalar_lea.vmem %s2095_s0, %s1109_s12  ;;  %338 = sbr.rel (%p2108_p8) target bundleno = 51 (0x33), region = 56 }
  0x30   : > { %v1610_v0 = vmov 0.0  }
  0x31   : > { %339 = vst [vmem:[#allocation2] sm:$0xff] %v1610_v0  ;;  %340 = vst [vmem:[#allocation3] sm:$0xff] %v1610_v0 }
  0x32   : > { %341 = vst [vmem:[#allocation4] sm:$0xff] %v1610_v0 }
  0x33 PF: > { %v1467_v1 = vld [vmem:[%s2096_s1 + $0x8] sm:$0xff]   ;;  %v1468_v2 = vld [vmem:[%s2096_s1] sm:$0xff]   ;;  %vm371_vm0 = vcmask 261120   ;;  %v344_v5 = vld [vmem:[%s330_s17 + $0x10] sm:$0xff]  ;;  %v1611_v6 = vmov 0.0   ;;  %vm1612_vm1 = vmmov 0  }
  0x34   : > { %1236 = vmatprep.subr.bf16.mxu0 %v1467_v1  ;;  %v342_v3 = vld [vmem:[%s330_s17] sm:$0xff]  ;;  %v343_v4 = vld [vmem:[%s330_s17 + $0x8] sm:$0xff]  ;;  %1244 = vmatprep.subr.bf16.mxu1 %v1611_v6  ;;  %v345_v8 = vld [vmem:[%s330_s17 + $0x18] sm:$0xff]  ;;  %v1613_v36 = vmov 1.0|1.0   ;;  %s2104_s12 = sshll.u32 %s1684_s9, 9 }
  0x35   : > { %1237 = vmatpush3.bf16.msra.mxu0 %v1467_v1  ;;  %v346_v7 = vpack.c.bf16 %v343_v4, %v342_v3  ;;  %v1754_v9 = vld [vmem:[%s2098_s3 + $0x38] sm:$0xff]   ;;  %v347_v10 = vpack.c.bf16 %v345_v8, %v344_v5  ;;  %v1761_v11 = vld [vmem:[%s2098_s3 + $0x30] sm:$0xff]   ;;  %v1768_v12 = vld [vmem:[%s2098_s3 + $0x28] sm:$0xff]   ;;  %1260 = vmatprep.mubr.msk.bf16.mxu1 %vm1612_vm1, %v1611_v6  ;;  %s994_s13 = sshll.u32 %s1740_s20, 4  ;;  %s2009_s21 = scalar_lea.hbm %s2103_s8, %s2104_s12  ;;  %s2011_s13 = int_to_ptr.vmem [resolvable:$true] %s994_s13 }
  0x36   : > { %1238 = vmatprep.subr.bf16.mxu0 %v1468_v2  ;;  %1245 = vmatpush3.bf16.msra.mxu1 %v1754_v9  ;;  %v1776_v13 = vld [vmem:[%s2098_s3 + $0x20] sm:$0xff]   ;;  %v1784_v14 = vld [vmem:[%s2098_s3 + $0x18] sm:$0xff]   ;;  %v1791_v15 = vld [vmem:[%s2098_s3 + $0x10] sm:$0xff]   ;;  %s1511_s24 = scalar_lea.vmem %s2011_s13, 512  ;;  %s1614_s26 = smov [#allocation9]  }
  0x37   : > { %1240 = vmatprep.mubr.msk.bf16.mxu0 %vm371_vm0, %v346_v7  ;;  %1246 = vmatprep.subr.bf16.mxu1 %v1611_v6  ;;  %v1799_v16 = vld [vmem:[%s2098_s3 + $0x8] sm:$0xff]   ;;  %v1806_v17 = vld [vmem:[%s2098_s3] sm:$0xff]   ;;  %v1814_v18 = vld [vmem:[#allocation5 + $0x38] sm:$0xff]   ;;  %p1512_p9 = scmp.ne.s32.totalorder %s2011_s13, %s1511_s24  ;;  %s1515_s10 = sshll.u32 %s1614_s26, 4  ;;  %s1516_s10 = int_to_ptr.vmem [resolvable:$false] %s1515_s10 }
  0x38   : > { %v1817_v19 = vld [vmem:[#allocation5 + $0x30] sm:$0xff]   ;;  %v1821_v20 = vld [vmem:[#allocation5 + $0x28] sm:$0xff]   ;;  %v1825_v21 = vld [vmem:[#allocation5 + $0x20] sm:$0xff]   ;;  %s1517_s18 = scalar_lea.vmem %s1516_s10, 1024  ;;  %p1518_p12 = scmp.lt.s32.totalorder %s2011_s13, %s1516_s10 }
  0x39   : > { %1239 = vmatpush3.bf16.msra.mxu0 %v1468_v2  ;;  %v1829_v22 = vld [vmem:[#allocation5 + $0x18] sm:$0xff]   ;;  %v1833_v23 = vld [vmem:[#allocation5 + $0x10] sm:$0xff]   ;;  %v1837_v24 = vld [vmem:[#allocation5 + $0x8] sm:$0xff]   ;;  %p1513_p10 = pnand %p1512_p9, %p1701_p5  ;;  %p1519_p13 = scmp.lt.s32.totalorder %s1517_s18, %s1511_s24 }
  0x3a   : > { %1264 = vmatprep.subr.bf16.mxu0 %v1611_v6  ;;  %1247 = vmatpush3.bf16.msra.mxu1 %v1761_v11  ;;  %v1111_v26 = vld [vmem:[%s2097_s2] ss:$0 sm:$0xff]  ;;  %v1895_v44 = vld [vmem:[#allocation5] sm:$0xff]   ;;  %v462_v46 = vld [vmem:[#allocation3] sm:$0xff] }
  0x3b   : > { %1248 = vmatprep.subr.bf16.mxu1 %v1611_v6  ;;  %v461_v28 = vld [vmem:[#allocation2] sm:$0xff]  ;;  %p1514_p11 = pneg %p1513_p10  ;;  %p1520_p0 = por %p1519_p13, %p1518_p12 }
  0x3c   : > { %1241 = vmatmul.mubr.msk.bf16.vlgmr.msra.gmra.mxu0 %vm371_vm0, %v347_v10  ;;  %v1918_v45 = vld [vmem:[%s2099_s4] ss:$0 sm:$0xff] }
  0x3d   : > { %1280 = vmatprep.mubr.msk.bf16.mxu0 %vm1612_vm1, %v1611_v6  ;;  %1265 = vmatpush3.bf16.msra.mxu0 %v1814_v18  ;;  %p1521_p1 = pnand %p1520_p0, %p1514_p11 }
  0x3e   : > { %1249 = vmatpush3.bf16.msra.mxu1 %v1768_v12  ;;  %1266 = vmatprep.subr.bf16.mxu0 %v1611_v6 }
  0x3f   : > { %1250 = vmatprep.subr.bf16.mxu1 %v1611_v6 }
  0x41   : > { %1267 = vmatpush3.bf16.msra.mxu0 %v1817_v19 }
  0x42   : > { %1251 = vmatpush3.bf16.msra.mxu1 %v1776_v13  ;;  %1268 = vmatprep.subr.bf16.mxu0 %v1611_v6 }
  0x43   : > { %1252 = vmatprep.subr.bf16.mxu1 %v1611_v6 }
  0x45   : > { %1269 = vmatpush3.bf16.msra.mxu0 %v1821_v20 }
  0x46   : > { %1253 = vmatpush3.bf16.msra.mxu1 %v1784_v14  ;;  %1270 = vmatprep.subr.bf16.mxu0 %v1611_v6 }
  0x47   : > { %1254 = vmatprep.subr.bf16.mxu1 %v1611_v6 }
  0x49   : > { %1271 = vmatpush3.bf16.msra.mxu0 %v1825_v21 }
  0x4a   : > { %1255 = vmatpush3.bf16.msra.mxu1 %v1791_v15  ;;  %1272 = vmatprep.subr.bf16.mxu0 %v1611_v6 }
  0x4b   : > { %1256 = vmatprep.subr.bf16.mxu1 %v1611_v6 }
  0x4d   : > { %1273 = vmatpush3.bf16.msra.mxu0 %v1829_v22 }
  0x4e   : > { %1257 = vmatpush3.bf16.msra.mxu1 %v1799_v16  ;;  %1274 = vmatprep.subr.bf16.mxu0 %v1611_v6 }
  0x4f   : > { %1258 = vmatprep.subr.bf16.mxu1 %v1611_v6 }
  0x51   : > { %1275 = vmatpush3.bf16.msra.mxu0 %v1833_v23 }
  0x52   : > { %1259 = vmatpush3.bf16.msra.mxu1 %v1806_v17  ;;  %1276 = vmatprep.subr.bf16.mxu0 %v1611_v6 }
  0x53   : > { %1284 = vmatprep.subr.bf16.mxu1 %v1611_v6 }
  0x55   : > { %1277 = vmatpush3.bf16.msra.mxu0 %v1837_v24 }
  0x56   : > { %1278 = vmatprep.subr.bf16.mxu0 %v1611_v6 }
  0x59   : > { %1279 = vmatpush3.bf16.msra.mxu0 %v1895_v44 }
  0x5a   : > { %1304 = vmatprep.subr.bf16.mxu0 %v1611_v6 }
  0xfc   : > { %v1242_v25 = vpop.f32.mrf.mxu0 }
  0xfd   : > { %v421_v37 = vadd.f32 %v1242_v25, %v1111_v26 }
  0xfe   : > { %v412_v27 = vpop.f32.mrf.mxu0 }
  0xff   : > { %v413_v29 = vadd.f32 %v1111_v26, %v412_v27 }
 0x100   : > { %v1243_v30 = vpop.f32.mrf.mxu0 }
 0x101   : > { %v464_v31 = vadd.f32 %v461_v28, %v413_v29  ;;  %v424_v40 = vadd.f32 %v1243_v30, %v1111_v26 }
 0x102   : > { %v415_v32 = vpop.f32.mrf.mxu0 }
 0x103   : > { %v416_v33 = vadd.f32 %v1111_v26, %v415_v32  ;;  %vm465_vm2 = vcmp.ge.f32.partialorder %v464_v31, 1.0 }
 0x104   : > { %v467_v34 = vsel %vm465_vm2, 0.0, %v464_v31  ;;  %vm1125_vm3 = vmpackc.low %vm465_vm2, %vm465_vm2 }
 0x105   : > { %v668_v35 = vadd.f32 %v467_v34, %v416_v33  ;;  %1261 = vmatmul.mubr.msk.bf16.vlgmr.msra.gmra.mxu1 %vm1125_vm3, %v1613_v36 }
 0x106   : > { %1285 = vmatpush3.bf16.msra.mxu1 %v1754_v9  ;;  %1300 = vmatprep.mubr.msk.bf16.mxu1 %vm1612_vm1, %v1611_v6 }
 0x107   : > { %vm669_vm4 = vcmp.ge.f32.partialorder %v668_v35, 1.0  ;;  %1286 = vmatprep.subr.bf16.mxu1 %v1611_v6 }
 0x108   : > { %v671_v38 = vsel %vm669_vm4, 0.0, %v668_v35  ;;  %vm1138_vm7 = vmpackc.low %vm669_vm4, %vm669_vm4 }
 0x109   : > { %v764_v39 = vadd.f32 %v671_v38, %v421_v37 }
 0x10a   : > { %1287 = vmatpush3.bf16.msra.mxu1 %v1761_v11 }
 0x10b   : > { %1288 = vmatprep.subr.bf16.mxu1 %v1611_v6  ;;  %vm765_vm5 = vcmp.ge.f32.partialorder %v764_v39, 1.0 }
 0x10c   : > { %v767_v41 = vsel %vm765_vm5, 0.0, %v764_v39  ;;  %vm1142_vm8 = vmpackc.low %vm765_vm5, %vm765_vm5 }
 0x10d   : > { %v860_v42 = vadd.f32 %v767_v41, %v424_v40 }
 0x10e   : > { %1289 = vmatpush3.bf16.msra.mxu1 %v1768_v12 }
 0x10f   : > { %1290 = vmatprep.subr.bf16.mxu1 %v1611_v6  ;;  %vm861_vm6 = vcmp.ge.f32.partialorder %v860_v42, 1.0 }
 0x110   : > { %v863_v43 = vsel %vm861_vm6, 0.0, %v860_v42  ;;  %vm1146_vm9 = vmpackc.low %vm861_vm6, %vm861_vm6 }
 0x111   : > { %956 = vst [vmem:[#allocation2] sm:$0xff] %v863_v43 }
 0x112   : > { %1291 = vmatpush3.bf16.msra.mxu1 %v1776_v13 }
 0x113   : > { %1292 = vmatprep.subr.bf16.mxu1 %v1611_v6 }
 0x116   : > { %1293 = vmatpush3.bf16.msra.mxu1 %v1784_v14 }
 0x117   : > { %1294 = vmatprep.subr.bf16.mxu1 %v1611_v6 }
 0x11a   : > { %1295 = vmatpush3.bf16.msra.mxu1 %v1791_v15 }
 0x11b   : > { %1296 = vmatprep.subr.bf16.mxu1 %v1611_v6 }
 0x11e   : > { %1297 = vmatpush3.bf16.msra.mxu1 %v1799_v16 }
 0x11f   : > { %1298 = vmatprep.subr.bf16.mxu1 %v1611_v6 }
 0x122   : > { %1299 = vmatpush3.bf16.msra.mxu1 %v1806_v17 }
 0x123   : > { %1324 = vmatprep.subr.bf16.mxu1 %v1611_v6 }
 0x125   : > { %1301 = vmatmul.mubr.msk.bf16.vlgmr.msra.gmra.mxu1 %vm1138_vm7, %v1613_v36 }
 0x126   : > { %1325 = vmatpush3.bf16.msra.mxu1 %v1754_v9  ;;  %1340 = vmatprep.mubr.msk.bf16.mxu1 %vm1612_vm1, %v1611_v6 }
 0x127   : > { %1326 = vmatprep.subr.bf16.mxu1 %v1611_v6 }
 0x12a   : > { %1327 = vmatpush3.bf16.msra.mxu1 %v1761_v11 }
 0x12b   : > { %1328 = vmatprep.subr.bf16.mxu1 %v1611_v6 }
 0x12e   : > { %1329 = vmatpush3.bf16.msra.mxu1 %v1768_v12 }
 0x12f   : > { %1330 = vmatprep.subr.bf16.mxu1 %v1611_v6 }
 0x132   : > { %1331 = vmatpush3.bf16.msra.mxu1 %v1776_v13 }
 0x133   : > { %1332 = vmatprep.subr.bf16.mxu1 %v1611_v6 }
 0x136   : > { %1333 = vmatpush3.bf16.msra.mxu1 %v1784_v14 }
 0x137   : > { %1334 = vmatprep.subr.bf16.mxu1 %v1611_v6 }
 0x13a   : > { %1335 = vmatpush3.bf16.msra.mxu1 %v1791_v15 }
 0x13b   : > { %1336 = vmatprep.subr.bf16.mxu1 %v1611_v6 }
 0x13e   : > { %1337 = vmatpush3.bf16.msra.mxu1 %v1799_v16 }
 0x13f   : > { %1338 = vmatprep.subr.bf16.mxu1 %v1611_v6 }
 0x142   : > { %1339 = vmatpush3.bf16.msra.mxu1 %v1806_v17 }
 0x143   : > { %1364 = vmatprep.subr.bf16.mxu1 %v1611_v6 }
 0x145   : > { %1341 = vmatmul.mubr.msk.bf16.vlgmr.msra.gmra.mxu1 %vm1142_vm8, %v1613_v36 }
 0x146   : > { %1365 = vmatpush3.bf16.msra.mxu1 %v1754_v9  ;;  %1380 = vmatprep.mubr.msk.bf16.mxu1 %vm1612_vm1, %v1611_v6 }
 0x147   : > { %1366 = vmatprep.subr.bf16.mxu1 %v1611_v6 }
 0x14a   : > { %1367 = vmatpush3.bf16.msra.mxu1 %v1761_v11 }
 0x14b   : > { %1368 = vmatprep.subr.bf16.mxu1 %v1611_v6 }
 0x14e   : > { %1369 = vmatpush3.bf16.msra.mxu1 %v1768_v12  ;;  %v1127_v12 = vld [vmem:[%s2101_s6] ss:$0 sm:$0xff] }
 0x14f   : > { %1370 = vmatprep.subr.bf16.mxu1 %v1611_v6 }
 0x152   : > { %1371 = vmatpush3.bf16.msra.mxu1 %v1776_v13  ;;  %v463_v13 = vld [vmem:[#allocation4] sm:$0xff] }
 0x153   : > { %1372 = vmatprep.subr.bf16.mxu1 %v1611_v6 }
 0x156   : > { %1373 = vmatpush3.bf16.msra.mxu1 %v1784_v14 }
 0x157   : > { %1374 = vmatprep.subr.bf16.mxu1 %v1611_v6 }
 0x15a   : > { %1375 = vmatpush3.bf16.msra.mxu1 %v1791_v15 }
 0x15b   : > { %1376 = vmatprep.subr.bf16.mxu1 %v1611_v6 }
 0x15e   : > { %1377 = vmatpush3.bf16.msra.mxu1 %v1799_v16 }
 0x15f   : > { %1378 = vmatprep.subr.bf16.mxu1 %v1611_v6 }
 0x162   : > { %1379 = vmatpush3.bf16.msra.mxu1 %v1806_v17 }
 0x165   : > { %1381 = vmatmul.mubr.msk.bf16.vlgmr.msra.gmra.mxu1 %vm1146_vm9, %v1613_v36 }
 0x1c5   : > { %v557_v47 = vpop.f32.mrf.mxu1 }
 0x1c6   : > { %v558_v48 = vadd.f32 %v1918_v45, %v557_v47 }
 0x1c7   : > { %v1262_v49 = vpop.f32.mrf.mxu1 }
 0x1c8   : > { %v563_v50 = vadd.f32 %v558_v48, %v462_v46 }
 0x1c9   : > { %v560_v51 = vpop.f32.mrf.mxu1 }
 0x1ca   : > { %vm564_vm10 = vcmp.ge.f32.partialorder %v563_v50, 1.0 }
 0x1cb   : > { %vm1136_vm11 = vmpackc.low %vm564_vm10, %vm564_vm10  ;;  %v1263_v52 = vpop.f32.mrf.mxu1  ;;  %v566_v55 = vsel %vm564_vm10, 0.0, %v563_v50 }
 0x1cc   : > { %1281 = vmatmul.mubr.msk.bf16.vlgmr.msra.gmra.mxu0 %vm1136_vm11, %v1613_v36 }
 0x1cd   : > { %1305 = vmatpush3.bf16.msra.mxu0 %v1814_v18  ;;  %1320 = vmatprep.mubr.msk.bf16.mxu0 %vm1612_vm1, %v1611_v6 }
 0x1ce   : > { %1306 = vmatprep.subr.bf16.mxu0 %v1611_v6 }
 0x1d1   : > { %1307 = vmatpush3.bf16.msra.mxu0 %v1817_v19 }
 0x1d2   : > { %1308 = vmatprep.subr.bf16.mxu0 %v1611_v6 }
 0x1d5   : > { %1309 = vmatpush3.bf16.msra.mxu0 %v1821_v20 }
 0x1d6   : > { %1310 = vmatprep.subr.bf16.mxu0 %v1611_v6 }
 0x1d9   : > { %1311 = vmatpush3.bf16.msra.mxu0 %v1825_v21 }
 0x1da   : > { %1312 = vmatprep.subr.bf16.mxu0 %v1611_v6 }
 0x1dd   : > { %1313 = vmatpush3.bf16.msra.mxu0 %v1829_v22 }
 0x1de   : > { %1314 = vmatprep.subr.bf16.mxu0 %v1611_v6 }
 0x1e1   : > { %1315 = vmatpush3.bf16.msra.mxu0 %v1833_v23 }
 0x1e2   : > { %1316 = vmatprep.subr.bf16.mxu0 %v1611_v6 }
 0x1e5   : > { %v707_v53 = vpop.f32.mrf.mxu1  ;;  %1317 = vmatpush3.bf16.msra.mxu0 %v1837_v24 }
 0x1e6   : > { %v708_v54 = vadd.f32 %v1918_v45, %v707_v53  ;;  %1318 = vmatprep.subr.bf16.mxu0 %v1611_v6 }
 0x1e7   : > { %v1302_v56 = vpop.f32.mrf.mxu1 }
 0x1e8   : > { %v713_v57 = vadd.f32 %v708_v54, %v566_v55 }
 0x1e9   : > { %v710_v58 = vpop.f32.mrf.mxu1  ;;  %1319 = vmatpush3.bf16.msra.mxu0 %v1895_v44 }
 0x1ea   : > { %vm714_vm12 = vcmp.ge.f32.partialorder %v713_v57, 1.0  ;;  %1344 = vmatprep.subr.bf16.mxu0 %v1611_v6 }
 0x1eb   : > { %vm1140_vm13 = vmpackc.low %vm714_vm12, %vm714_vm12  ;;  %v1303_v59 = vpop.f32.mrf.mxu1  ;;  %v716_v62 = vsel %vm714_vm12, 0.0, %v713_v57 }
 0x1ec   : > { %1321 = vmatmul.mubr.msk.bf16.vlgmr.msra.gmra.mxu0 %vm1140_vm13, %v1613_v36 }
 0x1ed   : > { %1345 = vmatpush3.bf16.msra.mxu0 %v1814_v18  ;;  %1360 = vmatprep.mubr.msk.bf16.mxu0 %vm1612_vm1, %v1611_v6 }
 0x1ee   : > { %1346 = vmatprep.subr.bf16.mxu0 %v1611_v6 }
 0x1f1   : > { %1347 = vmatpush3.bf16.msra.mxu0 %v1817_v19 }
 0x1f2   : > { %1348 = vmatprep.subr.bf16.mxu0 %v1611_v6 }
 0x1f5   : > { %1349 = vmatpush3.bf16.msra.mxu0 %v1821_v20 }
 0x1f6   : > { %1350 = vmatprep.subr.bf16.mxu0 %v1611_v6 }
 0x1f9   : > { %1351 = vmatpush3.bf16.msra.mxu0 %v1825_v21 }
 0x1fa   : > { %1352 = vmatprep.subr.bf16.mxu0 %v1611_v6 }
 0x1fd   : > { %1353 = vmatpush3.bf16.msra.mxu0 %v1829_v22 }
 0x1fe   : > { %1354 = vmatprep.subr.bf16.mxu0 %v1611_v6 }
 0x201   : > { %1355 = vmatpush3.bf16.msra.mxu0 %v1833_v23 }
 0x202   : > { %1356 = vmatprep.subr.bf16.mxu0 %v1611_v6 }
 0x205   : > { %v803_v60 = vpop.f32.mrf.mxu1  ;;  %1357 = vmatpush3.bf16.msra.mxu0 %v1837_v24 }
 0x206   : > { %v804_v61 = vadd.f32 %v1918_v45, %v803_v60  ;;  %1358 = vmatprep.subr.bf16.mxu0 %v1611_v6 }
 0x207   : > { %v1342_v63 = vpop.f32.mrf.mxu1 }
 0x208   : > { %v809_v0 = vadd.f32 %v804_v61, %v716_v62 }
 0x209   : > { %v806_v1 = vpop.f32.mrf.mxu1  ;;  %1359 = vmatpush3.bf16.msra.mxu0 %v1895_v44 }
 0x20a   : > { %vm810_vm14 = vcmp.ge.f32.partialorder %v809_v0, 1.0  ;;  %1384 = vmatprep.subr.bf16.mxu0 %v1611_v6 }
 0x20b   : > { %vm1144_vm15 = vmpackc.low %vm810_vm14, %vm810_vm14  ;;  %v1343_v2 = vpop.f32.mrf.mxu1  ;;  %v812_v5 = vsel %vm810_vm14, 0.0, %v809_v0 }
 0x20c   : > { %1361 = vmatmul.mubr.msk.bf16.vlgmr.msra.gmra.mxu0 %vm1144_vm15, %v1613_v36 }
 0x20d   : > { %1385 = vmatpush3.bf16.msra.mxu0 %v1814_v18  ;;  %1400 = vmatprep.mubr.msk.bf16.mxu0 %vm1612_vm1, %v1611_v6 }
 0x20e   : > { %1386 = vmatprep.subr.bf16.mxu0 %v1611_v6 }
 0x211   : > { %1387 = vmatpush3.bf16.msra.mxu0 %v1817_v19 }
 0x212   : > { %1388 = vmatprep.subr.bf16.mxu0 %v1611_v6 }
 0x215   : > { %1389 = vmatpush3.bf16.msra.mxu0 %v1821_v20 }
 0x216   : > { %1390 = vmatprep.subr.bf16.mxu0 %v1611_v6 }
 0x219   : > { %1391 = vmatpush3.bf16.msra.mxu0 %v1825_v21 }
 0x21a   : > { %1392 = vmatprep.subr.bf16.mxu0 %v1611_v6 }
 0x21d   : > { %1393 = vmatpush3.bf16.msra.mxu0 %v1829_v22 }
 0x21e   : > { %1394 = vmatprep.subr.bf16.mxu0 %v1611_v6 }
 0x221   : > { %1395 = vmatpush3.bf16.msra.mxu0 %v1833_v23 }
 0x222   : > { %1396 = vmatprep.subr.bf16.mxu0 %v1611_v6 }
 0x225   : > { %v899_v3 = vpop.f32.mrf.mxu1  ;;  %1397 = vmatpush3.bf16.msra.mxu0 %v1837_v24 }
 0x226   : > { %v900_v4 = vadd.f32 %v1918_v45, %v899_v3  ;;  %1398 = vmatprep.subr.bf16.mxu0 %v1611_v6 }
 0x227   : > { %v1382_v7 = vpop.f32.mrf.mxu1 }
 0x228   : > { %v905_v8 = vadd.f32 %v900_v4, %v812_v5 }
 0x229   : > { %v902_v9 = vpop.f32.mrf.mxu1  ;;  %1399 = vmatpush3.bf16.msra.mxu0 %v1895_v44 }
 0x22a   : > { %vm906_vm0 = vcmp.ge.f32.partialorder %v905_v8, 1.0 }
 0x22b   : > { %v908_v10 = vsel %vm906_vm0, 0.0, %v905_v8  ;;  %vm1148_vm1 = vmpackc.low %vm906_vm0, %vm906_vm0  ;;  %v1383_v11 = vpop.f32.mrf.mxu1 }
 0x22c   : > { %957 = vst [vmem:[#allocation3] sm:$0xff] %v908_v10  ;;  %1401 = vmatmul.mubr.msk.bf16.vlgmr.msra.gmra.mxu0 %vm1148_vm1, %v1613_v36 }
 0x28c   : > { %v656_v14 = vpop.f32.mrf.mxu0 }
 0x28d   : > { %v657_v15 = vadd.f32 %v1127_v12, %v656_v14 }
 0x28e   : > { %v1282_v16 = vpop.f32.mrf.mxu0 }
 0x28f   : > { %v662_v17 = vadd.f32 %v657_v15, %v463_v13  ;;  %667 = vst [vmem:[%s1740_s20] sm:$0xff] %v657_v15 }
 0x290   : > { %v659_v18 = vpop.f32.mrf.mxu0 }
 0x291   : > { %vm663_vm2 = vcmp.ge.f32.partialorder %v662_v17, 1.0 }
 0x292   : > { %v1283_v19 = vpop.f32.mrf.mxu0  ;;  %v664_v20 = vsel %vm663_vm2, 1.0, %v1611_v6  ;;  %v665_v23 = vsel %vm663_vm2, 0.0, %v662_v17 }
 0x293   : > { %666 = vst [vmem:[%s1738_s19] sm:$0xff] %v664_v20 }
 0x2ac   : > { %v752_v21 = vpop.f32.mrf.mxu0 }
 0x2ad   : > { %v753_v22 = vadd.f32 %v1127_v12, %v752_v21 }
 0x2ae   : > { %v1322_v24 = vpop.f32.mrf.mxu0 }
 0x2af   : > { %v758_v25 = vadd.f32 %v753_v22, %v665_v23  ;;  %763 = vst [vmem:[%s1740_s20 + $0x8] sm:$0xff] %v753_v22 }
 0x2b0   : > { %v755_v26 = vpop.f32.mrf.mxu0 }
 0x2b1   : > { %vm759_vm3 = vcmp.ge.f32.partialorder %v758_v25, 1.0 }
 0x2b2   : > { %v1323_v27 = vpop.f32.mrf.mxu0  ;;  %v760_v28 = vsel %vm759_vm3, 1.0, %v1611_v6  ;;  %v761_v31 = vsel %vm759_vm3, 0.0, %v758_v25 }
 0x2b3   : > { %762 = vst [vmem:[%s1738_s19 + $0x8] sm:$0xff] %v760_v28 }
 0x2cc   : > { %v848_v29 = vpop.f32.mrf.mxu0 }
 0x2cd   : > { %v849_v30 = vadd.f32 %v1127_v12, %v848_v29 }
 0x2ce   : > { %v1362_v32 = vpop.f32.mrf.mxu0 }
 0x2cf   : > { %v854_v33 = vadd.f32 %v849_v30, %v761_v31  ;;  %859 = vst [vmem:[%s1740_s20 + $0x10] sm:$0xff] %v849_v30 }
 0x2d0   : > { %v851_v34 = vpop.f32.mrf.mxu0 }
 0x2d1   : > { %vm855_vm4 = vcmp.ge.f32.partialorder %v854_v33, 1.0 }
 0x2d2   : > { %v1363_v35 = vpop.f32.mrf.mxu0  ;;  %v856_v36 = vsel %vm855_vm4, 1.0, %v1611_v6  ;;  %v857_v39 = vsel %vm855_vm4, 0.0, %v854_v33 }
 0x2d3   : > { %858 = vst [vmem:[%s1738_s19 + $0x10] sm:$0xff] %v856_v36 }
 0x2ec   : > { %v944_v37 = vpop.f32.mrf.mxu0 }
 0x2ed   : > { %v945_v38 = vadd.f32 %v1127_v12, %v944_v37 }
 0x2ee   : > { %v1402_v40 = vpop.f32.mrf.mxu0 }
 0x2ef   : > { %v950_v41 = vadd.f32 %v945_v38, %v857_v39  ;;  %955 = vst [vmem:[%s1740_s20 + $0x18] sm:$0xff] %v945_v38 }
 0x2f0   : > { %v947_v42 = vpop.f32.mrf.mxu0 }
 0x2f1   : > { %1524 = shalt.err (!%p1521_p1)
}
 0x2f2   : > { %s1525_s20 = scalar_lea.hbm %s2009_s21, 512  ;;  %s1529_s26 = scalar_lea.hbm %s2103_s8, 1024 }
 0x2f3   : > { %p1526_p2 = scmp.ne.s32.totalorder %s2009_s21, %s1525_s20  ;;  %p1530_p7 = scmp.lt.s32.totalorder %s2009_s21, %s2103_s8 }
 0x2f4   : > { %p1531_p6 = scmp.lt.s32.totalorder %s1529_s26, %s1525_s20 }
 0x2f5   : > { %p1527_p3 = pnand %p1526_p2, %p1701_p5 }
 0x2f6   : > { %p1532_p8 = por %p1531_p6, %p1530_p7 }
 0x2f7   : > { %p1528_p4 = pneg %p1527_p3 }
 0x2f9   : > { %p1533_p9 = pnand %p1532_p8, %p1528_p4 }
 0x2fb   : > { %1536 = shalt.err (!%p1533_p9)
}
 0x2fc   : > { %s1615_s24 = smov 128   ;;  %s1616_s22 = smov 8   ;;  %vm951_vm5 = vcmp.ge.f32.partialorder %v950_v41, 1.0  ;;  %v1403_v45 = vpop.f32.mrf.mxu0 }
 0x2fd   : > { %s2109_s12 = scalar_lea.sflag [#allocation10], %s1731_s25  ;;  %s2110_s23 = sshll.u32 %s1684_s9, 9  ;;  %v952_v43 = vsel %vm951_vm5, 1.0, %v1611_v6  ;;  %v953_v44 = vsel %vm951_vm5, 0.0, %v950_v41 }
 0x2fe   : > { %1409 = dma.vmem_to_hbm [thread:$0]  (%p1701_p5), %s2011_s13, 512, %s2009_s21, %s2109_s12, %s1615_s24, %s1615_s24, %s1616_s22   ;;  %958 = vst [vmem:[#allocation4] sm:$0xff] %v953_v44 }
 0x2ff   : > { %s2046_s20 = scalar_lea.hbm %s2102_s7, %s2110_s23  ;;  %s2111_s17 = sshll.u32 %s1738_s19, 4  ;;  %954 = vst [vmem:[%s1738_s19 + $0x18] sm:$0xff] %v952_v43  ;;  %s2050_s17 = int_to_ptr.vmem [resolvable:$true] %s2111_s17 }
 0x300   : > { %s960_s13 = scalar_lea.sflag [#allocation7], %s1731_s25  ;;  %s1537_s21 = scalar_lea.vmem %s2050_s17, 512 }
 0x301   : > { %p1538_p10 = scmp.ne.s32.totalorder %s2050_s17, %s1537_s21  ;;  %s1617_s9 = smov [#allocation8]  }
 0x302   : > { %s1541_s26 = sshll.u32 %s1617_s9, 4  ;;  %s1542_s26 = int_to_ptr.vmem [resolvable:$false] %s1541_s26 }
 0x303   : > { %p1539_p11 = pnand %p1538_p10, %p1701_p5  ;;  %s1543_s12 = scalar_lea.vmem %s1542_s26, 1024 }
 0x304   : > { %p1544_p13 = scmp.lt.s32.totalorder %s2050_s17, %s1542_s26  ;;  %p1545_p0 = scmp.lt.s32.totalorder %s1543_s12, %s1537_s21 }
 0x305   : > { %p1540_p12 = pneg %p1539_p11 }
 0x306   : > { %p1546_p1 = por %p1545_p0, %p1544_p13 }
 0x308   : > { %p1547_p2 = pnand %p1546_p1, %p1540_p12 }
 0x30a   : > { %1550 = shalt.err (!%p1547_p2)
}
 0x30b   : > { %s1551_s19 = scalar_lea.hbm %s2046_s20, 512  ;;  %s1555_s10 = scalar_lea.hbm %s2102_s7, 1024 }
 0x30c   : > { %p1552_p3 = scmp.ne.s32.totalorder %s2046_s20, %s1551_s19  ;;  %p1556_p6 = scmp.lt.s32.totalorder %s2046_s20, %s2102_s7 }
 0x30d   : > { %p1557_p8 = scmp.lt.s32.totalorder %s1555_s10, %s1551_s19 }
 0x30e   : > { %p1553_p4 = pnand %p1552_p3, %p1701_p5 }
 0x30f   : > { %p1558_p9 = por %p1557_p8, %p1556_p6 }
 0x310   : > { %p1554_p7 = pneg %p1553_p4 }
 0x312   : > { %p1559_p10 = pnand %p1558_p9, %p1554_p7 }
 0x314   : > { %1562 = shalt.err (!%p1559_p10)
}
 0x315   : > { %1408 = dma.vmem_to_hbm [thread:$0]  (%p1701_p5), %s2050_s17, 512, %s2046_s20, %s960_s13, %s1615_s24, %s1615_s24, %s1616_s22  }
 0x316 PF: > { %p1425_p11 = scmp.ge.s32.totalorder %s1605_s30, 2  ;;  %s1009_s21 = sand.u32 1, %s1593_s27  }
 0x317   : > { %p2112_p12 = scmp.ne.s32.totalorder %s2106_s16, 0  ;;  %s1010_s26 = scalar_lea.sflag [#allocation7], %s1009_s21 }
 0x319   : > { %p1417_p13 = pnand %p1425_p11, %p2112_p12 }
 0x31b   : > { %p1418_p0 = pneg %p1417_p13 }
 0x31d   : > { %1584 = dma.done.wait (%p1418_p0), %s1010_s26, 512  }
 0x31e   : > { %1586 = vsyncadd (%p1418_p0), %s1010_s26, 4294966784  ;;  %s1019_s12 = scalar_lea.sflag [#allocation10], %s1009_s21 }
 0x31f   : > { %1588 = dma.done.wait (%p1418_p0), %s1019_s12, 512  }
 0x320   : > { %1590 = vsyncadd (%p1418_p0), %s1019_s12, 4294966784  ;;  %p23_p5 = scmp.ge.s32.totalorder %s1688_s11, 4   ;;  %s2113_s27 = smov %s1597_s28 }
 0x321   : > { %s2114_s28 = smov %s1601_s29  ;;  %s2115_s29 = smov %s1699_s14 }
 0x322   : > { %s2116_s30 = smov %s1688_s11  ;;  %25 = sbr.rel (!%p23_p5) target bundleno = 6 (0x6), region = 109 }
 0x327   :  { %1024 = vsyncpa [#allocation6], 1 }
 0x328   :  { %1026 = vsyncpa [#allocation6 + $0x1], 1 }
 0x329   :  { %1027 = vsyncpa [#allocation7], 1 }
 0x32a   :  { %1029 = vsyncpa [#allocation7 + $0x1], 1 }
 0x32b   :  { %1030 = vsyncpa [#allocation10], 1 }
 0x32c   :  { %1032 = vsyncpa [#allocation10 + $0x1], 1 }

</bundles_post_ra>
